<compile_context>
chip_gen: v5e
topology: v5e:2x2
jax: 0.10.0
libtpu: 0.0.40
codegen_flags: <defaults>
</compile_context>

<pallas_src>
import functools
import itertools
import math

import jax
import jax.numpy as jnp
import numpy as np
from jax.experimental import pallas as pl
from jax.experimental.pallas import tpu as pltpu


def _anchor_kernel(cv_hi_ref, cv_mid_ref, cv_lo_ref, sel_ref, base_ref, out_ref):
    # cv_*_ref : (tile_rows, k) f32 — bf16-exact byte slices of the vertical centers.
    # sel_ref  : (k, gw)  f32 — 0/1 * is_vertical placement matrix (resident).
    # base_ref : (1, gw)  f32 — horizontal center + per-box corner delta (resident).
    # out_ref  : (tile_rows, gw) f32, gw % 128 == 0 -> unmasked full-lane stores.
    sel = sel_ref[...]
    acc = jnp.dot(cv_hi_ref[...], sel, preferred_element_type=jnp.float32)
    acc = acc + jnp.dot(cv_mid_ref[...], sel, preferred_element_type=jnp.float32)
    acc = acc + jnp.dot(cv_lo_ref[...], sel, preferred_element_type=jnp.float32)
    out_ref[...] = acc + base_ref[...]


def _vmem_capacity_bytes():
    try:
        info = pltpu.get_tpu_info()
        cap = getattr(info, "vmem_capacity_bytes", None)
        if cap:
            return int(cap)
    except Exception:
        pass
    return 64 << 20  # conservative (v7x-sized)


def _pick_tile_rows(n_groups, row_bytes, vmem_cap):
    """Output rows per grid step: multiple of 8 (or full), generation-sized tiles."""
    if n_groups <= 8:
        return n_groups
    target = (12 << 20) if vmem_cap >= (96 << 20) else (6 << 20)  # v5e/v6e vs v7x
    rows = max(8, target // max(row_bytes, 1))
    rows = min(rows, n_groups)
    rows = max(8, (rows // 8) * 8)
    # Keep >= 2 grid steps when there is enough work so both v7x TCs get a share.
    if rows >= n_groups and n_groups >= 16:
        rows = max(8, (((n_groups + 1) // 2) // 8) * 8)
    return rows


@functools.lru_cache(maxsize=None)
def _anchors_cached(img_shape, fm_shape, boxes, window_size):
    _, _, height_img, width_img = img_shape
    _, _, height_fm, width_fm = fm_shape

    height_reduction = height_img / height_fm  # Python float64, as in torch
    width_reduction = width_img / width_fm

    n_y = height_fm - window_size + 1
    n_x = width_fm - window_size + 1
    n_boxes = len(boxes)
    n_anchors = n_y * n_x * n_boxes
    lanes = n_x * n_boxes * 4                     # per-y lane width (multiple of 4)

    cv_off = int(height_reduction * window_size / 2)
    ch_off = int(width_reduction * window_size / 2)

    # Fold k y-rows so the store width gw is a multiple of 128 (unmasked vst).
    k = 128 // math.gcd(lanes, 128)
    if 4 * k * (k * lanes) > (8 << 20):           # selection constant would be huge
        k = 1                                     # graceful fallback (masked stores)
    gw = k * lanes
    n_groups = -(-n_y // k)

    vmem_cap = _vmem_capacity_bytes()
    tile_rows = _pick_tile_rows(n_groups, 4 * gw, vmem_cap)
    grid_rows = pl.cdiv(n_groups, tile_rows)
    rows_pad = grid_rows * tile_rows              # pad cv inputs so DMAs stay in-bounds

    # ---- host tables (exact float64 int() semantics, tiny) -------------------
    is_v_np = np.zeros((lanes,), dtype=np.float32)
    base_np = np.zeros((lanes,), dtype=np.float32)
    li = 0
    for x in range(n_x):
        ch = int(width_reduction * x) + ch_off
        for box in boxes:
            bh2, bw2 = box[0] // 2, box[1] // 2
            deltas = (-bh2, -bw2, bh2, bw2)       # (top, left, bottom, right)
            for col in range(4):
                vertical = col in (0, 2)
                is_v_np[li] = 1.0 if vertical else 0.0
                base_np[li] = deltas[col] + (0.0 if vertical else ch)
                li += 1

    sel_np = np.zeros((k, gw), dtype=np.float32)
    for yy in range(k):
        sel_np[yy, yy * lanes:(yy + 1) * lanes] = is_v_np
    base_row_np = np.tile(base_np, k).reshape(1, gw).astype(np.float32)

    # Vertical centers, split into bf16-exact byte slices (exact for v < 2**24).
    cv_hi_np = np.zeros((rows_pad, k), dtype=np.float32)
    cv_mid_np = np.zeros((rows_pad, k), dtype=np.float32)
    cv_lo_np = np.zeros((rows_pad, k), dtype=np.float32)
    for y in range(n_y):
        v = int(height_reduction * y) + cv_off
        g, yy = divmod(y, k)
        cv_hi_np[g, yy] = float(v & 0xFF0000)
        cv_mid_np[g, yy] = float(v & 0x00FF00)
        cv_lo_np[g, yy] = float(v & 0x0000FF)

    # ---- VMEM budget ---------------------------------------------------------
    need = 4 * (2 * tile_rows * gw + 6 * tile_rows * k + 2 * k * gw + 2 * gw)
    vmem_limit = max(need + (4 << 20), 24 << 20)
    vmem_limit = min(vmem_limit, (vmem_cap * 3) // 4)
    vmem_limit = max(vmem_limit, need + (1 << 20))

    out2d = pl.pallas_call(
        _anchor_kernel,
        out_shape=jax.ShapeDtypeStruct((n_groups, gw), jnp.float32),
        grid=(grid_rows,),
        in_specs=[
            pl.BlockSpec((tile_rows, k), lambda i: (i, 0)),
            pl.BlockSpec((tile_rows, k), lambda i: (i, 0)),
            pl.BlockSpec((tile_rows, k), lambda i: (i, 0)),
            pl.BlockSpec((k, gw), lambda i: (0, 0)),
            pl.BlockSpec((1, gw), lambda i: (0, 0)),
        ],
        out_specs=pl.BlockSpec((tile_rows, gw), lambda i: (i, 0)),
        compiler_params=pltpu.CompilerParams(
            dimension_semantics=("parallel",),
            vmem_limit_bytes=int(vmem_limit),
        ),
        cost_estimate=pl.CostEstimate(
            flops=2 * n_groups * gw * 3 * k + n_groups * gw,
            transcendentals=0,
            bytes_accessed=4 * (n_groups * gw + 3 * rows_pad * k + k * gw + gw),
        ),
    )(
        jnp.asarray(cv_hi_np),
        jnp.asarray(cv_mid_np),
        jnp.asarray(cv_lo_np),
        jnp.asarray(sel_np),
        jnp.asarray(base_row_np),
    )

    flat = out2d.reshape(-1)
    need_elems = n_anchors * 4
    if flat.shape[0] != need_elems:               # only when n_y % k != 0 (one-time)
        flat = flat[:need_elems]
    return flat.reshape(n_anchors, 4)


def anchor_generator_pallas(img, fm, boxes, window_size):
    """JAX/Pallas equivalent of AnchorGenerator.forward(img, fm) (memoized)."""
    boxes_t = tuple((int(b[0]), int(b[1])) for b in boxes)
    return _anchors_cached(tuple(img.shape), tuple(fm.shape), boxes_t, int(window_size))


def _reference_anchors(img_shape, fm_shape, boxes, window_size):
    """Pure-Python reference identical to the PyTorch module."""
    _, _, height_img, width_img = img_shape
    _, _, height_fm, width_fm = fm_shape
    height_reduction = height_img / height_fm
    width_reduction = width_img / width_fm
    anchors = []
    for y, x in itertools.product(
        range(height_fm - window_size + 1), range(width_fm - window_size + 1)
    ):
        anchor_center_v = int(height_reduction * y) + int(height_reduction * window_size / 2)
        anchor_center_h = int(width_reduction * x) + int(width_reduction * window_size / 2)
        for box in boxes:
            anchor_top, anchor_bottom = anchor_center_v - box[0] // 2, anchor_center_v + box[0] // 2
            anchor_left, anchor_right = anchor_center_h - box[1] // 2, anchor_center_h + box[1] // 2
            anchors.append((anchor_top, anchor_left, anchor_bottom, anchor_right))
    return np.asarray(anchors, dtype=np.float32)


if __name__ == "__main__":
    key = jax.random.PRNGKey(0)
    k1, k2, k3, k4, k5, k6 = jax.random.split(key, 6)

    # Case 1: small NCHW shapes; lanes = 84 -> folded to gw = 2688 (21*128).
    img = jax.random.normal(k1, (2, 3, 16, 16), dtype=jnp.float32)
    fm = jax.random.normal(k2, (2, 4, 8, 8), dtype=jnp.float32)
    boxes = [(4, 4), (6, 8), (8, 8)]
    window_size = 2

    out = jax.block_until_ready(anchor_generator_pallas(img, fm, boxes, window_size))
    ref = _reference_anchors(img.shape, fm.shape, boxes, window_size)
    assert out.shape == ref.shape, (out.shape, ref.shape)
    assert out.dtype == jnp.float32
    np.testing.assert_allclose(np.asarray(out), ref, rtol=0, atol=0)

    # Memoization: second call with the same static config returns the cached array.
    out_again = anchor_generator_pallas(img, fm, boxes, window_size)
    assert out_again is out

    # Case 2: non-integer reduction factor; lanes = 120 -> folded to gw = 1920.
    img2 = jax.random.normal(k3, (1, 1, 20, 20), dtype=jnp.float32)
    fm2 = jax.random.normal(k4, (1, 1, 12, 12), dtype=jnp.float32)
    boxes2 = [(3, 5), (6, 6), (8, 4)]
    window_size2 = 3

    out2 = jax.block_until_ready(anchor_generator_pallas(img2, fm2, boxes2, window_size2))
    ref2 = _reference_anchors(img2.shape, fm2.shape, boxes2, window_size2)
    assert out2.shape == ref2.shape, (out2.shape, ref2.shape)
    np.testing.assert_allclose(np.asarray(out2), ref2, rtol=0, atol=0)

    # Case 3: lanes already 128-aligned (n_x=8, 4 boxes -> lanes = 128, k = 1 path).
    img3 = jax.random.normal(k5, (1, 1, 18, 27), dtype=jnp.float32)
    fm3 = jax.random.normal(k6, (1, 1, 9, 9), dtype=jnp.float32)
    boxes3 = [(2, 2), (4, 6), (5, 3), (7, 7)]
    window_size3 = 2

    out3 = jax.block_until_ready(anchor_generator_pallas(img3, fm3, boxes3, window_size3))
    ref3 = _reference_anchors(img3.shape, fm3.shape, boxes3, window_size3)
    assert out3.shape == ref3.shape, (out3.shape, ref3.shape)
    np.testing.assert_allclose(np.asarray(out3), ref3, rtol=0, atol=0)

    print("KERNEL_OK")
</pallas_src>

<mosaic_0001>
module attributes {stable_mosaic.version = 11 : i64} {
  func.func @_anchor_kernel(%arg0: i32, %arg1: memref<1x32xf32, #tpu.memory_space<vmem>>, %arg2: memref<1x32xf32, #tpu.memory_space<vmem>>, %arg3: memref<1x32xf32, #tpu.memory_space<vmem>>, %arg4: memref<32x2688xf32, #tpu.memory_space<vmem>>, %arg5: memref<1x2688xf32, #tpu.memory_space<vmem>>, %arg6: memref<1x2688xf32, #tpu.memory_space<vmem>>) attributes {dimension_semantics = [#tpu.dimension_semantics<parallel>], iteration_bounds = array<i64: 1>, scalar_prefetch = 0 : i64, scratch_operands = 0 : i64, tpu.core_type = #tpu.core_type<tc>, window_params = [{transform_indices = @transform_0, window_bounds = array<i64: 1, 32>}, {transform_indices = @transform_1, window_bounds = array<i64: 1, 32>}, {transform_indices = @transform_2, window_bounds = array<i64: 1, 32>}, {pipeline_mode = #tpu.pipeline_mode<synchronous>, transform_indices = @transform_3, window_bounds = array<i64: 32, 2688>}, {pipeline_mode = #tpu.pipeline_mode<synchronous>, transform_indices = @transform_4, window_bounds = array<i64: 1, 2688>}, {transform_indices = @transform_5, window_bounds = array<i64: 1, 2688>}]} {
    %c0 = arith.constant 0 : index
    %c0_0 = arith.constant 0 : index
    %0 = vector.load %arg4[%c0, %c0_0] : memref<32x2688xf32, #tpu.memory_space<vmem>>, vector<32x2688xf32>
    %c0_1 = arith.constant 0 : index
    %c0_2 = arith.constant 0 : index
    %1 = vector.load %arg1[%c0_1, %c0_2] : memref<1x32xf32, #tpu.memory_space<vmem>>, vector<1x32xf32>
    %cst = arith.constant dense<0.000000e+00> : vector<1x2688xf32>
    %2 = tpu.matmul %1, %0, %cst {dimension_numbers = #tpu.dot_dimension_numbers<[1], [0], [0], [1], [0, 0, 1, 1], [], []>} : vector<1x32xf32>, vector<32x2688xf32>, vector<1x2688xf32> -> vector<1x2688xf32>
    %c0_3 = arith.constant 0 : index
    %c0_4 = arith.constant 0 : index
    %3 = vector.load %arg2[%c0_3, %c0_4] : memref<1x32xf32, #tpu.memory_space<vmem>>, vector<1x32xf32>
    %cst_5 = arith.constant dense<0.000000e+00> : vector<1x2688xf32>
    %4 = tpu.matmul %3, %0, %cst_5 {dimension_numbers = #tpu.dot_dimension_numbers<[1], [0], [0], [1], [0, 0, 1, 1], [], []>} : vector<1x32xf32>, vector<32x2688xf32>, vector<1x2688xf32> -> vector<1x2688xf32>
    %5 = arith.addf %2, %4 : vector<1x2688xf32>
    %c0_6 = arith.constant 0 : index
    %c0_7 = arith.constant 0 : index
    %6 = vector.load %arg3[%c0_6, %c0_7] : memref<1x32xf32, #tpu.memory_space<vmem>>, vector<1x32xf32>
    %cst_8 = arith.constant dense<0.000000e+00> : vector<1x2688xf32>
    %7 = tpu.matmul %6, %0, %cst_8 {dimension_numbers = #tpu.dot_dimension_numbers<[1], [0], [0], [1], [0, 0, 1, 1], [], []>} : vector<1x32xf32>, vector<32x2688xf32>, vector<1x2688xf32> -> vector<1x2688xf32>
    %8 = arith.addf %5, %7 : vector<1x2688xf32>
    %c0_9 = arith.constant 0 : index
    %c0_10 = arith.constant 0 : index
    %9 = vector.load %arg5[%c0_9, %c0_10] : memref<1x2688xf32, #tpu.memory_space<vmem>>, vector<1x2688xf32>
    %10 = arith.addf %8, %9 : vector<1x2688xf32>
    %c0_11 = arith.constant 0 : index
    %c0_12 = arith.constant 0 : index
    %11 = vector.load %arg6[%c0_11, %c0_12] : memref<1x2688xf32, #tpu.memory_space<vmem>>, vector<1x2688xf32>
    tpu.vector_store %arg6[%c0_11, %c0_12], %10 {strides = array<i32>} : memref<1x2688xf32, #tpu.memory_space<vmem>>, vector<1x2688xf32>,
    return
  }
  func.func @transform_0(%arg0: i32) -> (i32, i32) {
    %c0_i32 = arith.constant 0 : i32
    %c0_i32_0 = arith.constant 0 : i32
    return %arg0, %c0_i32 : i32, i32
  }
  func.func @transform_1(%arg0: i32) -> (i32, i32) {
    %c0_i32 = arith.constant 0 : i32
    %c0_i32_0 = arith.constant 0 : i32
    return %arg0, %c0_i32 : i32, i32
  }
  func.func @transform_2(%arg0: i32) -> (i32, i32) {
    %c0_i32 = arith.constant 0 : i32
    %c0_i32_0 = arith.constant 0 : i32
    return %arg0, %c0_i32 : i32, i32
  }
  func.func @transform_3(%arg0: i32) -> (i32, i32) {
    %c0_i32 = arith.constant 0 : i32
    %c0_i32_0 = arith.constant 0 : i32
    %c0_i32_1 = arith.constant 0 : i32
    return %c0_i32, %c0_i32_0 : i32, i32
  }
  func.func @transform_4(%arg0: i32) -> (i32, i32) {
    %c0_i32 = arith.constant 0 : i32
    %c0_i32_0 = arith.constant 0 : i32
    %c0_i32_1 = arith.constant 0 : i32
    return %c0_i32, %c0_i32_0 : i32, i32
  }
  func.func @transform_5(%arg0: i32) -> (i32, i32) {
    %c0_i32 = arith.constant 0 : i32
    %c0_i32_0 = arith.constant 0 : i32
    return %arg0, %c0_i32 : i32, i32
  }
}

</mosaic_0001>

<bundles_post_ra>
// kernel: tpu_custom_call.1
= control target key start
LH: loop header
LB: loop body
LE: loop exit
PB: predicated region body
PF: predicated region fallthrough
CT: control target
= control target key end

     0   :  { %10 = vsyncpa [#allocation3], 0  ;;  %s2543_s0 = inlined_call_operand.hbm [shape: f32[1,32], index: 0, kind: input, shape index: {}]   ;;  %s2544_s1 = inlined_call_operand.hbm [shape: f32[1,32], index: 1, kind: input, shape index: {}]   ;;  %s2545_s2 = inlined_call_operand.vmem [shape: f32[1,32], index: 2, kind: input, shape index: {}]   ;;  %s2546_s3 = inlined_call_operand.hbm [shape: f32[32,2688], index: 3, kind: input, shape index: {}]   ;;  %s2547_s4 = inlined_call_operand.hbm [shape: f32[1,2688], index: 4, kind: input, shape index: {}]   ;;  %s2548_s5 = inlined_call_operand.hbm [shape: f32[1,2688], index: 5, kind: output, shape index: {}]  }
   0x1   :  { %11 = vsyncpa [#allocation6], 0 }
   0x2   :  { %12 = vsyncpa [#allocation9], 0  ;;  %s30_s20 = sshll.u32 %s2544_s1, 4  ;;  %s31_s20 = int_to_ptr.hbm [resolvable:$true] %s30_s20 }
   0x3   :  { %13 = vsyncpa [#allocation4], 0  ;;  %s1818_s21 = smov [#allocation5]   ;;  %s19_s25 = sshll.u32 %s2543_s0, 4  ;;  %s20_s25 = int_to_ptr.hbm [resolvable:$true] %s19_s25 }
   0x4   :  { %s32_s22 = sshll.u32 %s1818_s21, 4  ;;  %s1819_s26 = smov [#allocation2]   ;;  %s33_s22 = int_to_ptr.vmem [resolvable:$true] %s32_s22 }
   0x5   :  { %35 = dma.hbm_to_vmem [thread:$0]  %s31_s20, 16, %s33_s22, [#allocation6]  }
   0x6   :  { %s21_s27 = sshll.u32 %s1819_s26, 4  ;;  %s42_s30 = sshll.u32 %s2546_s3, 4  ;;  %s22_s27 = int_to_ptr.vmem [resolvable:$true] %s21_s27  ;;  %s43_s30 = int_to_ptr.hbm [resolvable:$true] %s42_s30 }
   0x7   :  { %24 = dma.hbm_to_vmem [thread:$0]  %s20_s25, 16, %s22_s27, [#allocation3]  }
   0x8   :  { %s1820_s1 = smov [#allocation7]   ;;  %s56_s9 = sshll.u32 %s2547_s4, 4  ;;  %s57_s9 = int_to_ptr.hbm [resolvable:$true] %s56_s9 }
   0x9   :  { %s44_s6 = sshll.u32 %s1820_s1, 4  ;;  %s1821_s10 = smov 2688   ;;  %s45_s6 = int_to_ptr.vmem [resolvable:$true] %s44_s6 }
   0xa   :  { %s1822_s0 = smov 168   ;;  %s1823_s11 = smov [#allocation8]  }
   0xb   :  { %50 = dma.hbm_to_vmem [thread:$0]  %s43_s30, 10752, %s45_s6, [#allocation6], %s1821_s10, %s1821_s10, %s1822_s0  }
   0xc   :  { %s58_s12 = sshll.u32 %s1823_s11, 4  ;;  %s59_s12 = int_to_ptr.vmem [resolvable:$true] %s58_s12 }
   0xd   :  { %61 = dma.hbm_to_vmem [thread:$0]  %s57_s9, 336, %s59_s12, [#allocation9]  }
   0xe   :  { %1810 = dma.done.wait [#allocation3], 16  }
   0xf   :  { %1811 = vsyncadd [#allocation3], 4294967280 }
  0x10   :  { %1812 = dma.done.wait [#allocation6], 10768  }
  0x11   :  { %1813 = vsyncadd [#allocation6], 4294956528 }
  0x12   :  { %1814 = dma.done.wait [#allocation9], 336  }
  0x13   :  { %1815 = vsyncadd [#allocation9], 4294966960  ;;  %v1867_v0 = vld [vmem:[#allocation7 + $0x1f8] sm:$0xff]  ;;  %v1869_v1 = vld [vmem:[#allocation7 + $0x200] sm:$0xff]  ;;  %vm164_vm0 = vcmask 261120   ;;  %vm1564_vm1 = vcmask 1040384  }
  0x14   :  { %v1871_v2 = vld [vmem:[#allocation7 + $0x208] sm:$0xff]  ;;  %180 = vmatpush.msra.mxu0 %v1867_v0  ;;  %200 = vmatpush.msra.mxu1 %v1869_v1  ;;  %v1875_v3 = vld [vmem:[#allocation7 + $0x210] sm:$0xff]  ;;  %v1879_v5 = vld [vmem:[#allocation7 + $0x158] sm:$0xff]  ;;  %vm1566_vm2 = vcmask 1042434   ;;  %vm1568_vm3 = vcmask 1041408   ;;  %vm1570_vm4 = vcmask 1044484  }
  0x15   :  { %2601 = vst [vmem:[#allocation15_spill] sm:$0xff] %v1871_v2  ;;  %v1877_v4 = vld [vmem:[#allocation7 + $0x150] sm:$0xff]  ;;  %220 = vmatpush.msra.mxu2 %v1871_v2  ;;  %240 = vmatpush.msra.mxu3 %v1875_v3  ;;  %v1883_v6 = vld [vmem:[#allocation7 + $0x160] sm:$0xff]  ;;  %v1885_v7 = vld [vmem:[#allocation7 + $0x168] sm:$0xff]  ;;  %vm1572_vm5 = vcmask 1046534   ;;  %vm1574_vm6 = vcmask 1045508  }
  0x16   :  { %v1887_v8 = vld [vmem:[#allocation7 + $0xa8] sm:$0xff]  ;;  %181 = vmatpush.msra.mxu0 %v1877_v4  ;;  %201 = vmatpush.msra.mxu1 %v1879_v5  ;;  %v1891_v9 = vld [vmem:[#allocation7 + $0xb0] sm:$0xff]  ;;  %v1893_v10 = vld [vmem:[#allocation7 + $0xb8] sm:$0xff]  ;;  %vm1576_vm7 = vcmask 1043456   ;;  %vm1587_vm8 = vcmask 1043459   ;;  %s1608_s16 = sshll.u32 %s2548_s5, 4  ;;  %s1609_s16 = int_to_ptr.hbm [resolvable:$true] %s1608_s16 }
  0x17   :  { %v1895_v11 = vld [vmem:[#allocation7 + $0xc0] sm:$0xff]  ;;  %221 = vmatpush.msra.mxu2 %v1883_v6  ;;  %241 = vmatpush.msra.mxu3 %v1885_v7  ;;  %v1901_v13 = vld [vmem:[#allocation7 + $0x8] sm:$0xff]  ;;  %v1905_v14 = vld [vmem:[#allocation7 + $0x10] sm:$0xff]  ;;  %vm1589_vm9 = vcmask 1042432  }
  0x18   :  { %v1899_v12 = vld [vmem:[#allocation7] sm:$0xff]  ;;  %182 = vmatpush.msra.mxu0 %v1887_v8  ;;  %202 = vmatpush.msra.mxu1 %v1891_v9  ;;  %v1907_v15 = vld [vmem:[#allocation7 + $0x18] sm:$0xff]  ;;  %v1917_v17 = vld [vmem:[#allocation7 + $0x228] sm:$0xff] }
  0x19   :  { %222 = vmatpush.msra.mxu2 %v1893_v10  ;;  %242 = vmatpush.msra.mxu3 %v1895_v11  ;;  %v1911_v16 = vld [vmem:[#allocation5] sm:$0x1]  ;;  %v1925_v19 = vld [vmem:[#allocation7 + $0x220] sm:$0xff]  ;;  %v1927_v20 = vld [vmem:[#allocation7 + $0x230] sm:$0xff] }
  0x1a   :  { %183 = vmatpush.msra.mxu0 %v1899_v12  ;;  %203 = vmatpush.msra.mxu1 %v1901_v13  ;;  %v1919_v18 = vld [vmem:[#allocation7 + $0x218] sm:$0xff]  ;;  %v1933_v21 = vld [vmem:[#allocation7 + $0x180] sm:$0xff]  ;;  %v1935_v22 = vld [vmem:[#allocation7 + $0x170] sm:$0xff] }
  0x1b   :  { %223 = vmatpush.msra.mxu2 %v1905_v14  ;;  %243 = vmatpush.msra.mxu3 %v1907_v15  ;;  %v1939_v23 = vld [vmem:[#allocation7 + $0x178] sm:$0xff]  ;;  %v1941_v24 = vld [vmem:[#allocation7 + $0x188] sm:$0xff]  ;;  %v1951_v27 = vld [vmem:[#allocation7 + $0xd0] sm:$0xff] }
  0x1c   :  { %1620 = vmatmul.msk.f32.vlgmr.msra.gmra.mxu0 %vm164_vm0, %v1911_v16  ;;  %1621 = vmatmul.msk.f32.vlgmr.msra.gmra.mxu1 %vm164_vm0, %v1911_v16  ;;  %v1945_v25 = vld [vmem:[#allocation7 + $0xd8] sm:$0xff]  ;;  %v1947_v26 = vld [vmem:[#allocation7 + $0xc8] sm:$0xff]  ;;  %v1953_v28 = vld [vmem:[#allocation7 + $0xe0] sm:$0xff] }
  0x1d   :  { %1622 = vmatmul.msk.f32.vlgmr.msra.gmra.mxu2 %vm164_vm0, %v1911_v16  ;;  %1623 = vmatmul.msk.f32.vlgmr.msra.gmra.mxu3 %vm164_vm0, %v1911_v16  ;;  %v1957_v29 = vld [vmem:[#allocation7 + $0x30] sm:$0xff]  ;;  %v1959_v30 = vld [vmem:[#allocation7 + $0x20] sm:$0xff]  ;;  %v1963_v31 = vld [vmem:[#allocation7 + $0x28] sm:$0xff] }
  0x1e   :  { %300 = vmatpush.msrb.mxu2 %v1917_v17  ;;  %260 = vmatpush.msrb.mxu0 %v1919_v18  ;;  %v1965_v32 = vld [vmem:[#allocation7 + $0x38] sm:$0xff]  ;;  %v1973_v33 = vld [vmem:[#allocation7 + $0x248] sm:$0xff]  ;;  %v1981_v35 = vld [vmem:[#allocation7 + $0x240] sm:$0xff] }
  0x1f   :  { %280 = vmatpush.msrb.mxu1 %v1925_v19  ;;  %320 = vmatpush.msrb.mxu3 %v1927_v20  ;;  %v1975_v34 = vld [vmem:[#allocation7 + $0x238] sm:$0xff]  ;;  %v1983_v36 = vld [vmem:[#allocation7 + $0x250] sm:$0xff]  ;;  %v1989_v37 = vld [vmem:[#allocation7 + $0x1a0] sm:$0xff] }
  0x20   :  { %301 = vmatpush.msrb.mxu2 %v1933_v21  ;;  %261 = vmatpush.msrb.mxu0 %v1935_v22  ;;  %2602 = vst [vmem:[#allocation16_spill] sm:$0xff] %v1983_v36  ;;  %v1991_v38 = vld [vmem:[#allocation7 + $0x190] sm:$0xff]  ;;  %v1995_v39 = vld [vmem:[#allocation7 + $0x198] sm:$0xff]  ;;  %v1997_v40 = vld [vmem:[#allocation7 + $0x1a8] sm:$0xff] }
  0x21   :  { %281 = vmatpush.msrb.mxu1 %v1939_v23  ;;  %321 = vmatpush.msrb.mxu3 %v1941_v24  ;;  %2603 = vst [vmem:[#allocation17_spill] sm:$0xff] %v1989_v37  ;;  %v2001_v41 = vld [vmem:[#allocation7 + $0xf8] sm:$0xff]  ;;  %v2003_v42 = vld [vmem:[#allocation7 + $0xe8] sm:$0xff]  ;;  %v2007_v43 = vld [vmem:[#allocation7 + $0xf0] sm:$0xff] }
  0x22   :  { %302 = vmatpush.msrb.mxu2 %v1945_v25  ;;  %262 = vmatpush.msrb.mxu0 %v1947_v26  ;;  %2604 = vst [vmem:[#allocation18_spill] sm:$0xff] %v2001_v41  ;;  %v2009_v44 = vld [vmem:[#allocation7 + $0x100] sm:$0xff]  ;;  %v2013_v45 = vld [vmem:[#allocation7 + $0x50] sm:$0xff]  ;;  %v2019_v47 = vld [vmem:[#allocation7 + $0x48] sm:$0xff] }
  0x23   :  { %282 = vmatpush.msrb.mxu1 %v1951_v27  ;;  %322 = vmatpush.msrb.mxu3 %v1953_v28  ;;  %2605 = vst [vmem:[#allocation19_spill] sm:$0xff] %v2009_v44  ;;  %v2015_v46 = vld [vmem:[#allocation7 + $0x40] sm:$0xff]  ;;  %v2021_v48 = vld [vmem:[#allocation7 + $0x58] sm:$0xff]  ;;  %v2029_v49 = vld [vmem:[#allocation7 + $0x268] sm:$0xff] }
  0x24   :  { %303 = vmatpush.msrb.mxu2 %v1957_v29  ;;  %263 = vmatpush.msrb.mxu0 %v1959_v30  ;;  %2606 = vst [vmem:[#allocation20_spill] sm:$0xff] %v2013_v45  ;;  %v2031_v50 = vld [vmem:[#allocation7 + $0x258] sm:$0xff]  ;;  %v2037_v51 = vld [vmem:[#allocation7 + $0x260] sm:$0xff]  ;;  %v2039_v52 = vld [vmem:[#allocation7 + $0x270] sm:$0xff] }
  0x25   :  { %283 = vmatpush.msrb.mxu1 %v1963_v31  ;;  %323 = vmatpush.msrb.mxu3 %v1965_v32  ;;  %2607 = vst [vmem:[#allocation21_spill] sm:$0xff] %v2021_v48  ;;  %v2045_v53 = vld [vmem:[#allocation7 + $0x1c0] sm:$0xff]  ;;  %v2047_v54 = vld [vmem:[#allocation7 + $0x1b0] sm:$0xff]  ;;  %v2051_v55 = vld [vmem:[#allocation7 + $0x1b8] sm:$0xff] }
  0x26   :  { %1624 = vmatmul.msk.f32.vlgmr.msrb.gmra.mxu0 %vm164_vm0, %v1911_v16  ;;  %1625 = vmatmul.msk.f32.vlgmr.msrb.gmra.mxu1 %vm164_vm0, %v1911_v16  ;;  %2608 = vst [vmem:[#allocation22_spill] sm:$0xff] %v2029_v49  ;;  %v2053_v56 = vld [vmem:[#allocation7 + $0x1c8] sm:$0xff]  ;;  %v2057_v57 = vld [vmem:[#allocation7 + $0x118] sm:$0xff]  ;;  %v2063_v59 = vld [vmem:[#allocation7 + $0x110] sm:$0xff] }
  0x27   :  { %1626 = vmatmul.msk.f32.vlgmr.msrb.gmra.mxu2 %vm164_vm0, %v1911_v16  ;;  %1627 = vmatmul.msk.f32.vlgmr.msrb.gmra.mxu3 %vm164_vm0, %v1911_v16  ;;  %2609 = vst [vmem:[#allocation23_spill] sm:$0xff] %v2037_v51  ;;  %v2059_v58 = vld [vmem:[#allocation7 + $0x108] sm:$0xff]  ;;  %v2065_v60 = vld [vmem:[#allocation7 + $0x120] sm:$0xff]  ;;  %v2069_v61 = vld [vmem:[#allocation7 + $0x70] sm:$0xff] }
  0x28   :  { %380 = vmatpush.msra.mxu2 %v1973_v33  ;;  %340 = vmatpush.msra.mxu0 %v1975_v34  ;;  %2610 = vst [vmem:[#allocation24_spill] sm:$0xff] %v2039_v52  ;;  %v2071_v62 = vld [vmem:[#allocation7 + $0x60] sm:$0xff]  ;;  %v2075_v63 = vld [vmem:[#allocation7 + $0x68] sm:$0xff] }
  0x29   :  { %360 = vmatpush.msra.mxu1 %v1981_v35  ;;  %400 = vmatpush.msra.mxu3 %v1983_v36  ;;  %2611 = vst [vmem:[#allocation25_spill] sm:$0xff] %v2045_v53 }
  0x2a   :  { %381 = vmatpush.msra.mxu2 %v1989_v37  ;;  %341 = vmatpush.msra.mxu0 %v1991_v38  ;;  %2612 = vst [vmem:[#allocation26_spill] sm:$0xff] %v2051_v55 }
  0x2b   :  { %361 = vmatpush.msra.mxu1 %v1995_v39  ;;  %401 = vmatpush.msra.mxu3 %v1997_v40  ;;  %2613 = vst [vmem:[#allocation27_spill] sm:$0xff] %v2053_v56 }
  0x2c   :  { %382 = vmatpush.msra.mxu2 %v2001_v41  ;;  %342 = vmatpush.msra.mxu0 %v2003_v42  ;;  %2614 = vst [vmem:[#allocation28_spill] sm:$0xff] %v2057_v57 }
  0x2d   :  { %362 = vmatpush.msra.mxu1 %v2007_v43  ;;  %402 = vmatpush.msra.mxu3 %v2009_v44  ;;  %2615 = vst [vmem:[#allocation29_spill] sm:$0xff] %v2059_v58  ;;  %v2115_v44 = vld [vmem:[#allocation7 + $0x128] sm:$0xff] }
  0x2e   :  { %383 = vmatpush.msra.mxu2 %v2013_v45  ;;  %343 = vmatpush.msra.mxu0 %v2015_v46  ;;  %2616 = vst [vmem:[#allocation30_spill] sm:$0xff] %v2063_v59 }
  0x2f   :  { %363 = vmatpush.msra.mxu1 %v2019_v47  ;;  %403 = vmatpush.msra.mxu3 %v2021_v48  ;;  %2617 = vst [vmem:[#allocation31_spill] sm:$0xff] %v2065_v60  ;;  %v2087_v48 = vld [vmem:[#allocation7 + $0x278] sm:$0xff] }
  0x30   :  { %1628 = vmatmul.msk.f32.vlgmr.msra.gmra.mxu0 %vm164_vm0, %v1911_v16  ;;  %1629 = vmatmul.msk.f32.vlgmr.msra.gmra.mxu1 %vm164_vm0, %v1911_v16  ;;  %2618 = vst [vmem:[#allocation32_spill] sm:$0xff] %v2069_v61 }
  0x31   :  { %1630 = vmatmul.msk.f32.vlgmr.msra.gmra.mxu2 %vm164_vm0, %v1911_v16  ;;  %1631 = vmatmul.msk.f32.vlgmr.msra.gmra.mxu3 %vm164_vm0, %v1911_v16  ;;  %2619 = vst [vmem:[#allocation33_spill] sm:$0xff] %v2071_v62 }
  0x32   :  { %460 = vmatpush.msrb.mxu2 %v2029_v49  ;;  %420 = vmatpush.msrb.mxu0 %v2031_v50  ;;  %2620 = vst [vmem:[#allocation34_spill] sm:$0xff] %v2075_v63 }
  0x33   :  { %440 = vmatpush.msrb.mxu1 %v2037_v51  ;;  %480 = vmatpush.msrb.mxu3 %v2039_v52  ;;  %v2077_v52 = vld [vmem:[#allocation7 + $0x78] sm:$0xff]  ;;  %2623 = vst [vmem:[#allocation37_spill] sm:$0xff] %v2087_v48 }
  0x34   :  { %461 = vmatpush.msrb.mxu2 %v2045_v53  ;;  %421 = vmatpush.msrb.mxu0 %v2047_v54  ;;  %2621 = vst [vmem:[#allocation35_spill] sm:$0xff] %v2077_v52 }
  0x35   :  { %441 = vmatpush.msrb.mxu1 %v2051_v55  ;;  %481 = vmatpush.msrb.mxu3 %v2053_v56  ;;  %v2085_v56 = vld [vmem:[#allocation7 + $0x288] sm:$0xff] }
  0x36   :  { %462 = vmatpush.msrb.mxu2 %v2057_v57  ;;  %422 = vmatpush.msrb.mxu0 %v2059_v58  ;;  %2622 = vst [vmem:[#allocation36_spill] sm:$0xff] %v2085_v56  ;;  %v2093_v57 = vld [vmem:[#allocation7 + $0x280] sm:$0xff]  ;;  %v2113_v58 = vld [vmem:[#allocation7 + $0x138] sm:$0xff] }
  0x37   :  { %442 = vmatpush.msrb.mxu1 %v2063_v59  ;;  %482 = vmatpush.msrb.mxu3 %v2065_v60  ;;  %2624 = vst [vmem:[#allocation38_spill] sm:$0xff] %v2093_v57  ;;  %v2095_v60 = vld [vmem:[#allocation7 + $0x290] sm:$0xff] }
  0x38   :  { %463 = vmatpush.msrb.mxu2 %v2069_v61  ;;  %423 = vmatpush.msrb.mxu0 %v2071_v62  ;;  %2625 = vst [vmem:[#allocation39_spill] sm:$0xff] %v2095_v60  ;;  %v2103_v61 = vld [vmem:[#allocation7 + $0x1d0] sm:$0xff]  ;;  %v2107_v62 = vld [vmem:[#allocation7 + $0x1d8] sm:$0xff] }
  0x39   :  { %443 = vmatpush.msrb.mxu1 %v2075_v63  ;;  %483 = vmatpush.msrb.mxu3 %v2077_v52  ;;  %v2101_v52 = vld [vmem:[#allocation7 + $0x1e0] sm:$0xff]  ;;  %v2109_v63 = vld [vmem:[#allocation7 + $0x1e8] sm:$0xff]  ;;  %2628 = vst [vmem:[#allocation42_spill] sm:$0xff] %v2113_v58  ;;  %v2119_v59 = vld [vmem:[#allocation7 + $0x130] sm:$0xff] }
  0x3a   :  { %1632 = vmatmul.msk.f32.vlgmr.msrb.gmra.mxu0 %vm164_vm0, %v1911_v16  ;;  %1633 = vmatmul.msk.f32.vlgmr.msrb.gmra.mxu1 %vm164_vm0, %v1911_v16  ;;  %2626 = vst [vmem:[#allocation40_spill] sm:$0xff] %v2101_v52 }
  0x3b   :  { %1634 = vmatmul.msk.f32.vlgmr.msrb.gmra.mxu2 %vm164_vm0, %v1911_v16  ;;  %1635 = vmatmul.msk.f32.vlgmr.msrb.gmra.mxu3 %vm164_vm0, %v1911_v16  ;;  %2627 = vst [vmem:[#allocation41_spill] sm:$0xff] %v2109_v63 }
  0x3c   :  { %540 = vmatpush.msra.mxu2 %v2085_v56  ;;  %500 = vmatpush.msra.mxu0 %v2087_v48  ;;  %v2121_v56 = vld [vmem:[#allocation7 + $0x140] sm:$0xff]  ;;  %v2125_v48 = vld [vmem:[#allocation7 + $0x90] sm:$0xff] }
  0x3d   :  { %520 = vmatpush.msra.mxu1 %v2093_v57  ;;  %560 = vmatpush.msra.mxu3 %v2095_v60  ;;  %2629 = vst [vmem:[#allocation43_spill] sm:$0xff] %v2121_v56  ;;  %v2127_v57 = vld [vmem:[#allocation7 + $0x80] sm:$0xff]  ;;  %v2131_v60 = vld [vmem:[#allocation7 + $0x88] sm:$0xff] }
  0x3e   :  { %541 = vmatpush.msra.mxu2 %v2101_v52  ;;  %501 = vmatpush.msra.mxu0 %v2103_v61  ;;  %2630 = vst [vmem:[#allocation44_spill] sm:$0xff] %v2125_v48  ;;  %v2133_v52 = vld [vmem:[#allocation7 + $0x98] sm:$0xff] }
  0x3f   :  { %521 = vmatpush.msra.mxu1 %v2107_v62  ;;  %561 = vmatpush.msra.mxu3 %v2109_v63  ;;  %2631 = vst [vmem:[#allocation45_spill] sm:$0xff] %v2133_v52  ;;  %v2141_v63 = vld [vmem:[#allocation7 + $0x298] sm:$0xff] }
  0x40   :  { %542 = vmatpush.msra.mxu2 %v2113_v58  ;;  %502 = vmatpush.msra.mxu0 %v2115_v44 }
  0x41   :  { %522 = vmatpush.msra.mxu1 %v2119_v59  ;;  %562 = vmatpush.msra.mxu3 %v2121_v56  ;;  %v2151_v56 = vld [vmem:[#allocation7 + $0x1f0] sm:$0xff] }
  0x42   :  { %543 = vmatpush.msra.mxu2 %v2125_v48  ;;  %503 = vmatpush.msra.mxu0 %v2127_v57  ;;  %v2163_v48 = vld [vmem:[#allocation7 + $0xa0] sm:$0xff] }
  0x43   :  { %523 = vmatpush.msra.mxu1 %v2131_v60  ;;  %563 = vmatpush.msra.mxu3 %v2133_v52  ;;  %v2157_v52 = vld [vmem:[#allocation7 + $0x148] sm:$0xff] }
  0x44   :  { %1636 = vmatmul.msk.f32.vlgmr.msra.gmra.mxu0 %vm164_vm0, %v1911_v16  ;;  %1637 = vmatmul.msk.f32.vlgmr.msra.gmra.mxu1 %vm164_vm0, %v1911_v16 }
  0x45   :  { %1638 = vmatmul.msk.f32.vlgmr.msra.gmra.mxu2 %vm164_vm0, %v1911_v16  ;;  %1639 = vmatmul.msk.f32.vlgmr.msra.gmra.mxu3 %vm164_vm0, %v1911_v16 }
  0x46   :  { %623 = vmatpush.msrb.mxu2 %v1869_v1  ;;  %580 = vmatpush.msrb.mxu0 %v2141_v63 }
  0x47   :  { %603 = vmatpush.msrb.mxu1 %v1867_v0  ;;  %643 = vmatpush.msrb.mxu3 %v1871_v2  ;;  %v2169_v2 = vld [vmem:[#allocation2] sm:$0x1] }
  0x48   :  { %624 = vmatpush.msrb.mxu2 %v1879_v5  ;;  %581 = vmatpush.msrb.mxu0 %v2151_v56 }
  0x49   :  { %604 = vmatpush.msrb.mxu1 %v1877_v4  ;;  %644 = vmatpush.msrb.mxu3 %v1883_v6 }
  0x4a   :  { %625 = vmatpush.msrb.mxu2 %v1891_v9  ;;  %582 = vmatpush.msrb.mxu0 %v2157_v52 }
  0x4b   :  { %605 = vmatpush.msrb.mxu1 %v1887_v8  ;;  %645 = vmatpush.msrb.mxu3 %v1893_v10 }
  0x4c   :  { %626 = vmatpush.msrb.mxu2 %v1901_v13  ;;  %583 = vmatpush.msrb.mxu0 %v2163_v48 }
  0x4d   :  { %606 = vmatpush.msrb.mxu1 %v1899_v12  ;;  %646 = vmatpush.msrb.mxu3 %v1905_v14 }
  0x4e   :  { %1640 = vmatmul.msk.f32.vlgmr.msrb.gmra.mxu0 %vm164_vm0, %v1911_v16  ;;  %1641 = vmatmul.msk.f32.vlgmr.msrb.gmra.mxu1 %vm164_vm0, %v2169_v2  ;;  %v2632_v16 = vld [vmem:[#allocation30_spill] sm:$0xff] }
  0x4f   :  { %1642 = vmatmul.msk.f32.vlgmr.msrb.gmra.mxu2 %vm164_vm0, %v2169_v2  ;;  %1643 = vmatmul.msk.f32.vlgmr.msrb.gmra.mxu3 %vm164_vm0, %v2169_v2 }
  0x50   :  { %703 = vmatpush.msra.mxu2 %v1925_v19  ;;  %663 = vmatpush.msra.mxu0 %v1875_v3 }
  0x51   :  { %683 = vmatpush.msra.mxu1 %v1919_v18  ;;  %723 = vmatpush.msra.mxu3 %v1917_v17 }
  0x52   :  { %704 = vmatpush.msra.mxu2 %v1939_v23  ;;  %664 = vmatpush.msra.mxu0 %v1885_v7 }
  0x53   :  { %684 = vmatpush.msra.mxu1 %v1935_v22  ;;  %724 = vmatpush.msra.mxu3 %v1933_v21 }
  0x54   :  { %705 = vmatpush.msra.mxu2 %v1951_v27  ;;  %665 = vmatpush.msra.mxu0 %v1895_v11 }
  0x55   :  { %685 = vmatpush.msra.mxu1 %v1947_v26  ;;  %725 = vmatpush.msra.mxu3 %v1945_v25 }
  0x56   :  { %706 = vmatpush.msra.mxu2 %v1963_v31  ;;  %666 = vmatpush.msra.mxu0 %v1907_v15 }
  0x57   :  { %686 = vmatpush.msra.mxu1 %v1959_v30  ;;  %726 = vmatpush.msra.mxu3 %v1957_v29 }
  0x58   :  { %1644 = vmatmul.msk.f32.vlgmr.msra.gmra.mxu0 %vm164_vm0, %v2169_v2  ;;  %1645 = vmatmul.msk.f32.vlgmr.msra.gmra.mxu1 %vm164_vm0, %v2169_v2 }
  0x59   :  { %1646 = vmatmul.msk.f32.vlgmr.msra.gmra.mxu2 %vm164_vm0, %v2169_v2  ;;  %1647 = vmatmul.msk.f32.vlgmr.msra.gmra.mxu3 %vm164_vm0, %v2169_v2 }
  0x5a   :  { %783 = vmatpush.msrb.mxu2 %v1981_v35  ;;  %743 = vmatpush.msrb.mxu0 %v1927_v20 }
  0x5b   :  { %763 = vmatpush.msrb.mxu1 %v1975_v34  ;;  %803 = vmatpush.msrb.mxu3 %v1973_v33 }
  0x5c   :  { %784 = vmatpush.msrb.mxu2 %v1995_v39  ;;  %744 = vmatpush.msrb.mxu0 %v1941_v24 }
  0x5d   :  { %764 = vmatpush.msrb.mxu1 %v1991_v38  ;;  %804 = vmatpush.msrb.mxu3 %v1989_v37  ;;  %v2635_v37 = vld [vmem:[#allocation28_spill] sm:$0xff] }
  0x5e   :  { %785 = vmatpush.msrb.mxu2 %v2007_v43  ;;  %745 = vmatpush.msrb.mxu0 %v1953_v28 }
  0x5f   :  { %765 = vmatpush.msrb.mxu1 %v2003_v42  ;;  %805 = vmatpush.msrb.mxu3 %v2001_v41  ;;  %v2634_v41 = vld [vmem:[#allocation29_spill] sm:$0xff] }
  0x60   :  { %786 = vmatpush.msrb.mxu2 %v2019_v47  ;;  %746 = vmatpush.msrb.mxu0 %v1965_v32 }
  0x61   :  { %766 = vmatpush.msrb.mxu1 %v2015_v46  ;;  %806 = vmatpush.msrb.mxu3 %v2013_v45  ;;  %v2633_v45 = vld [vmem:[#allocation19_spill] sm:$0xff] }
  0x62   :  { %1648 = vmatmul.msk.f32.vlgmr.msrb.gmra.mxu0 %vm164_vm0, %v2169_v2  ;;  %1649 = vmatmul.msk.f32.vlgmr.msrb.gmra.mxu1 %vm164_vm0, %v2169_v2 }
  0x63   :  { %1650 = vmatmul.msk.f32.vlgmr.msrb.gmra.mxu2 %vm164_vm0, %v2169_v2  ;;  %1651 = vmatmul.msk.f32.vlgmr.msrb.gmra.mxu3 %vm164_vm0, %v2169_v2 }
  0x64   :  { %863 = vmatpush.msra.mxu2 %v2037_v51  ;;  %823 = vmatpush.msra.mxu0 %v1983_v36  ;;  %v2636_v51 = vld [vmem:[#allocation34_spill] sm:$0xff]  ;;  %v2637_v36 = vld [vmem:[#allocation21_spill] sm:$0xff] }
  0x65   :  { %843 = vmatpush.msra.mxu1 %v2031_v50  ;;  %883 = vmatpush.msra.mxu3 %v2029_v49  ;;  %v2638_v49 = vld [vmem:[#allocation33_spill] sm:$0xff] }
  0x66   :  { %864 = vmatpush.msra.mxu2 %v2051_v55  ;;  %824 = vmatpush.msra.mxu0 %v1997_v40  ;;  %v2639_v55 = vld [vmem:[#allocation32_spill] sm:$0xff] }
  0x67   :  { %844 = vmatpush.msra.mxu1 %v2047_v54  ;;  %884 = vmatpush.msra.mxu3 %v2045_v53  ;;  %v2641_v53 = vld [vmem:[#allocation24_spill] sm:$0xff] }
  0x68   :  { %865 = vmatpush.msra.mxu2 %v2632_v16  ;;  %825 = vmatpush.msra.mxu0 %v2633_v45  ;;  %v2646_v16 = vld [vmem:[#allocation31_spill] sm:$0xff] }
  0x69   :  { %845 = vmatpush.msra.mxu1 %v2634_v41  ;;  %885 = vmatpush.msra.mxu3 %v2635_v37  ;;  %v2640_v37 = vld [vmem:[#allocation38_spill] sm:$0xff] }
  0x6a   :  { %866 = vmatpush.msra.mxu2 %v2636_v51  ;;  %826 = vmatpush.msra.mxu0 %v2637_v36  ;;  %v2642_v51 = vld [vmem:[#allocation37_spill] sm:$0xff]  ;;  %v2643_v36 = vld [vmem:[#allocation36_spill] sm:$0xff] }
  0x6b   :  { %846 = vmatpush.msra.mxu1 %v2638_v49  ;;  %886 = vmatpush.msra.mxu3 %v2639_v55  ;;  %v2644_v55 = vld [vmem:[#allocation27_spill] sm:$0xff]  ;;  %v2645_v49 = vld [vmem:[#allocation40_spill] sm:$0xff] }
  0x6c   :  { %1652 = vmatmul.msk.f32.vlgmr.msra.gmra.mxu0 %vm164_vm0, %v2169_v2  ;;  %1653 = vmatmul.msk.f32.vlgmr.msra.gmra.mxu1 %vm164_vm0, %v2169_v2 }
  0x6d   :  { %1654 = vmatmul.msk.f32.vlgmr.msra.gmra.mxu2 %vm164_vm0, %v2169_v2  ;;  %1655 = vmatmul.msk.f32.vlgmr.msra.gmra.mxu3 %vm164_vm0, %v2169_v2 }
  0x6e   :  { %943 = vmatpush.msrb.mxu2 %v2640_v37  ;;  %903 = vmatpush.msrb.mxu0 %v2641_v53  ;;  %v2647_v37 = vld [vmem:[#allocation35_spill] sm:$0xff] }
  0x6f   :  { %923 = vmatpush.msrb.mxu1 %v2642_v51  ;;  %963 = vmatpush.msrb.mxu3 %v2643_v36  ;;  %v2648_v36 = vld [vmem:[#allocation44_spill] sm:$0xff] }
  0x70   :  { %944 = vmatpush.msrb.mxu2 %v2107_v62  ;;  %904 = vmatpush.msrb.mxu0 %v2644_v55 }
  0x71   :  { %924 = vmatpush.msrb.mxu1 %v2103_v61  ;;  %964 = vmatpush.msrb.mxu3 %v2645_v49  ;;  %v2651_v49 = vld [vmem:[#allocation43_spill] sm:$0xff] }
  0x72   :  { %945 = vmatpush.msrb.mxu2 %v2119_v59  ;;  %905 = vmatpush.msrb.mxu0 %v2646_v16 }
  0x73   :  { %925 = vmatpush.msrb.mxu1 %v2115_v44  ;;  %965 = vmatpush.msrb.mxu3 %v2113_v58  ;;  %v2649_v58 = vld [vmem:[#allocation39_spill] sm:$0xff] }
  0x74   :  { %946 = vmatpush.msrb.mxu2 %v2131_v60  ;;  %906 = vmatpush.msrb.mxu0 %v2647_v37 }
  0x75   :  { %926 = vmatpush.msrb.mxu1 %v2127_v57  ;;  %966 = vmatpush.msrb.mxu3 %v2648_v36  ;;  %v2650_v36 = vld [vmem:[#allocation41_spill] sm:$0xff] }
  0x76   :  { %1656 = vmatmul.msk.f32.vlgmr.msrb.gmra.mxu0 %vm164_vm0, %v2169_v2  ;;  %1657 = vmatmul.msk.f32.vlgmr.msrb.gmra.mxu1 %vm164_vm0, %v2169_v2 }
  0x77   :  { %1658 = vmatmul.msk.f32.vlgmr.msrb.gmra.mxu2 %vm164_vm0, %v2169_v2  ;;  %1659 = vmatmul.msk.f32.vlgmr.msrb.gmra.mxu3 %vm164_vm0, %v2169_v2 }
  0x78   :  { %1027 = vmatpush.msra.mxu2 %v1867_v0  ;;  %983 = vmatpush.msra.mxu0 %v2649_v58  ;;  %v2652_v0 = vld [vmem:[#allocation45_spill] sm:$0xff] }
  0x79   :  { %1003 = vmatpush.msra.mxu1 %v2141_v63  ;;  %1047 = vmatpush.msra.mxu3 %v1869_v1  ;;  %v2296_v1 = vld [vmem:[%s2545_s2] sm:$0x1]  ;;  %s1824_s2 = smov [#allocation10]  }
  0x7a   :  { %1028 = vmatpush.msra.mxu2 %v1877_v4  ;;  %984 = vmatpush.msra.mxu0 %v2650_v36  ;;  %v2653_v4 = vld [vmem:[#allocation15_spill] sm:$0xff]  ;;  %s1606_s13 = sshll.u32 %s1824_s2, 4  ;;  %s1607_s13 = int_to_ptr.vmem [resolvable:$true] %s1606_s13 }
  0x7b   :  { %1004 = vmatpush.msra.mxu1 %v2151_v56  ;;  %1048 = vmatpush.msra.mxu3 %v1879_v5  ;;  %v2656_v5 = vld [vmem:[#allocation17_spill] sm:$0xff] }
  0x7c   :  { %1029 = vmatpush.msra.mxu2 %v1887_v8  ;;  %985 = vmatpush.msra.mxu0 %v2651_v49 }
  0x7d   :  { %1005 = vmatpush.msra.mxu1 %v2157_v52  ;;  %1049 = vmatpush.msra.mxu3 %v1891_v9  ;;  %v2658_v9 = vld [vmem:[#allocation18_spill] sm:$0xff] }
  0x7e   :  { %1030 = vmatpush.msra.mxu2 %v1899_v12  ;;  %986 = vmatpush.msra.mxu0 %v2652_v0  ;;  %v2661_v12 = vld [vmem:[#allocation20_spill] sm:$0xff] }
  0x7f   :  { %1006 = vmatpush.msra.mxu1 %v2163_v48  ;;  %1050 = vmatpush.msra.mxu3 %v1901_v13  ;;  %v2662_v13 = vld [vmem:[#allocation21_spill] sm:$0xff] }
  0x80   :  { %1660 = vmatmul.msk.f32.vlgmr.msra.gmra.mxu0 %vm164_vm0, %v2169_v2  ;;  %1661 = vmatmul.msk.f32.vlgmr.msra.gmra.mxu1 %vm164_vm0, %v2169_v2  ;;  %v2654_v2 = vld [vmem:[#allocation16_spill] sm:$0xff] }
  0x81   :  { %1662 = vmatmul.msk.f32.vlgmr.msra.gmra.mxu2 %vm164_vm0, %v2296_v1  ;;  %1663 = vmatmul.msk.f32.vlgmr.msra.gmra.mxu3 %vm164_vm0, %v2296_v1 }
  0x82   :  { %1107 = vmatpush.msrb.mxu2 %v1919_v18  ;;  %1067 = vmatpush.msrb.mxu0 %v2653_v4 }
  0x83   :  { %1087 = vmatpush.msrb.mxu1 %v1875_v3  ;;  %1127 = vmatpush.msrb.mxu3 %v1925_v19  ;;  %v2655_v3 = vld [vmem:[#allocation23_spill] sm:$0xff]  ;;  %v2665_v19 = vld [vmem:[#allocation38_spill] sm:$0xff] }
  0x84   :  { %1108 = vmatpush.msrb.mxu2 %v1935_v22  ;;  %1068 = vmatpush.msrb.mxu0 %v1883_v6  ;;  %v2657_v6 = vld [vmem:[#allocation26_spill] sm:$0xff] }
  0x85   :  { %1088 = vmatpush.msrb.mxu1 %v1885_v7  ;;  %1128 = vmatpush.msrb.mxu3 %v1939_v23  ;;  %v2667_v23 = vld [vmem:[#allocation28_spill] sm:$0xff] }
  0x86   :  { %1109 = vmatpush.msrb.mxu2 %v1947_v26  ;;  %1069 = vmatpush.msrb.mxu0 %v1893_v10  ;;  %v2659_v10 = vld [vmem:[#allocation30_spill] sm:$0xff] }
  0x87   :  { %1089 = vmatpush.msrb.mxu1 %v1895_v11  ;;  %1129 = vmatpush.msrb.mxu3 %v1951_v27  ;;  %v2660_v11 = vld [vmem:[#allocation33_spill] sm:$0xff] }
  0x88   :  { %1110 = vmatpush.msrb.mxu2 %v1959_v30  ;;  %1070 = vmatpush.msrb.mxu0 %v1905_v14  ;;  %v2663_v14 = vld [vmem:[#allocation34_spill] sm:$0xff] }
  0x89   :  { %1090 = vmatpush.msrb.mxu1 %v1907_v15  ;;  %1130 = vmatpush.msrb.mxu3 %v1963_v31  ;;  %v2664_v15 = vld [vmem:[#allocation22_spill] sm:$0xff] }
  0x8a   :  { %1664 = vmatmul.msk.f32.vlgmr.msrb.gmra.mxu0 %vm164_vm0, %v2296_v1  ;;  %1665 = vmatmul.msk.f32.vlgmr.msrb.gmra.mxu1 %vm164_vm0, %v2296_v1  ;;  %v2671_v31 = vld [vmem:[#allocation42_spill] sm:$0xff] }
  0x8b   :  { %1666 = vmatmul.msk.f32.vlgmr.msrb.gmra.mxu2 %vm164_vm0, %v2296_v1  ;;  %1667 = vmatmul.msk.f32.vlgmr.msrb.gmra.mxu3 %vm164_vm0, %v2296_v1 }
  0x8c   :  { %1187 = vmatpush.msra.mxu2 %v1975_v34  ;;  %1147 = vmatpush.msra.mxu0 %v1917_v17 }
  0x8d   :  { %1167 = vmatpush.msra.mxu1 %v1927_v20  ;;  %1207 = vmatpush.msra.mxu3 %v1981_v35  ;;  %v2666_v20 = vld [vmem:[#allocation25_spill] sm:$0xff] }
  0x8e   :  { %1188 = vmatpush.msra.mxu2 %v1991_v38  ;;  %1148 = vmatpush.msra.mxu0 %v1933_v21 }
  0x8f   :  { %1168 = vmatpush.msra.mxu1 %v1941_v24  ;;  %1208 = vmatpush.msra.mxu3 %v1995_v39  ;;  %v2668_v24 = vld [vmem:[#allocation32_spill] sm:$0xff] }
  0x90   :  { %1189 = vmatpush.msra.mxu2 %v2003_v42  ;;  %1149 = vmatpush.msra.mxu0 %v1945_v25  ;;  %v2669_v25 = vld [vmem:[#allocation36_spill] sm:$0xff] }
  0x91   :  { %1169 = vmatpush.msra.mxu1 %v1953_v28  ;;  %1209 = vmatpush.msra.mxu3 %v2007_v43  ;;  %v2670_v28 = vld [vmem:[#allocation40_spill] sm:$0xff] }
  0x92   :  { %1190 = vmatpush.msra.mxu2 %v2015_v46  ;;  %1150 = vmatpush.msra.mxu0 %v1957_v29 }
  0x93   :  { %1170 = vmatpush.msra.mxu1 %v1965_v32  ;;  %1210 = vmatpush.msra.mxu3 %v2019_v47  ;;  %v2672_v32 = vld [vmem:[#allocation44_spill] sm:$0xff] }
  0x94   :  { %1668 = vmatmul.msk.f32.vlgmr.msra.gmra.mxu0 %vm164_vm0, %v2296_v1  ;;  %1669 = vmatmul.msk.f32.vlgmr.msra.gmra.mxu1 %vm164_vm0, %v2296_v1 }
  0x95   :  { %1670 = vmatmul.msk.f32.vlgmr.msra.gmra.mxu2 %vm164_vm0, %v2296_v1  ;;  %1671 = vmatmul.msk.f32.vlgmr.msra.gmra.mxu3 %vm164_vm0, %v2296_v1 }
  0x96   :  { %1267 = vmatpush.msrb.mxu2 %v2031_v50  ;;  %1227 = vmatpush.msrb.mxu0 %v1973_v33 }
  0x97   :  { %1247 = vmatpush.msrb.mxu1 %v2654_v2  ;;  %1287 = vmatpush.msrb.mxu3 %v2655_v3 }
  0x98   :  { %1268 = vmatpush.msrb.mxu2 %v2047_v54  ;;  %1228 = vmatpush.msrb.mxu0 %v2656_v5 }
  0x99   :  { %1248 = vmatpush.msrb.mxu1 %v1997_v40  ;;  %1288 = vmatpush.msrb.mxu3 %v2657_v6  ;;  %v2364_v7 = vpop.f32.mrf.mxu0  ;;  %v2366_v8 = vpop.f32.mrf.mxu1 }
  0x9a   :  { %1269 = vmatpush.msrb.mxu2 %v2634_v41  ;;  %1229 = vmatpush.msrb.mxu0 %v2658_v9 }
  0x9b   :  { %1249 = vmatpush.msrb.mxu1 %v2633_v45  ;;  %1289 = vmatpush.msrb.mxu3 %v2659_v10 }
  0x9c   :  { %1270 = vmatpush.msrb.mxu2 %v2660_v11  ;;  %1230 = vmatpush.msrb.mxu0 %v2661_v12 }
  0x9d   :  { %1250 = vmatpush.msrb.mxu1 %v2662_v13  ;;  %1290 = vmatpush.msrb.mxu3 %v2663_v14 }
  0x9e   :  { %1672 = vmatmul.msk.f32.vlgmr.msrb.gmra.mxu0 %vm164_vm0, %v2296_v1  ;;  %1673 = vmatmul.msk.f32.vlgmr.msrb.gmra.mxu1 %vm164_vm0, %v2296_v1 }
  0x9f   :  { %1674 = vmatmul.msk.f32.vlgmr.msrb.gmra.mxu2 %vm164_vm0, %v2296_v1  ;;  %1675 = vmatmul.msk.f32.vlgmr.msrb.gmra.mxu3 %vm164_vm0, %v2296_v1 }
  0xa0   :  { %1347 = vmatpush.msra.mxu2 %v2642_v51  ;;  %1307 = vmatpush.msra.mxu0 %v2664_v15  ;;  %v2386_v17 = vpop.f32.mrf.mxu2  ;;  %v2388_v18 = vpop.f32.mrf.mxu3 }
  0xa1   :  { %1327 = vmatpush.msra.mxu1 %v2641_v53  ;;  %1367 = vmatpush.msra.mxu3 %v2665_v19 }
  0xa2   :  { %1348 = vmatpush.msra.mxu2 %v2103_v61  ;;  %1308 = vmatpush.msra.mxu0 %v2666_v20 }
  0xa3   :  { %1328 = vmatpush.msra.mxu1 %v2644_v55  ;;  %1368 = vmatpush.msra.mxu3 %v2107_v62  ;;  %v2396_v21 = vpop.f32.mrf.mxu0  ;;  %v2398_v22 = vpop.f32.mrf.mxu1 }
  0xa4   :  { %1349 = vmatpush.msra.mxu2 %v2115_v44  ;;  %1309 = vmatpush.msra.mxu0 %v2667_v23 }
  0xa5   :  { %1329 = vmatpush.msra.mxu1 %v2646_v16  ;;  %1369 = vmatpush.msra.mxu3 %v2119_v59 }
  0xa6   :  { %1350 = vmatpush.msra.mxu2 %v2127_v57  ;;  %1310 = vmatpush.msra.mxu0 %v2668_v24 }
  0xa7   :  { %1330 = vmatpush.msra.mxu1 %v2647_v37  ;;  %1370 = vmatpush.msra.mxu3 %v2131_v60 }
  0xa8   :  { %1676 = vmatmul.msk.f32.vlgmr.msra.gmra.mxu0 %vm164_vm0, %v2296_v1  ;;  %1677 = vmatmul.msk.f32.vlgmr.msra.gmra.mxu1 %vm164_vm0, %v2296_v1 }
  0xa9   :  { %1678 = vmatmul.msk.f32.vlgmr.msra.gmra.mxu2 %vm164_vm0, %v2296_v1  ;;  %1679 = vmatmul.msk.f32.vlgmr.msra.gmra.mxu3 %vm164_vm0, %v2296_v1 }
  0xaa   :  { %1427 = vmatpush.msrb.mxu2 %v2141_v63  ;;  %1387 = vmatpush.msrb.mxu0 %v2669_v25  ;;  %v2418_v26 = vpop.f32.mrf.mxu2  ;;  %v2420_v27 = vpop.f32.mrf.mxu3 }
  0xab   :  { %1407 = vmatpush.msrb.mxu1 %v2649_v58 }
  0xac   :  { %1428 = vmatpush.msrb.mxu2 %v2151_v56  ;;  %1388 = vmatpush.msrb.mxu0 %v2670_v28 }
  0xad   :  { %1408 = vmatpush.msrb.mxu1 %v2650_v36  ;;  %v2426_v29 = vpop.f32.mrf.mxu0  ;;  %v2428_v30 = vpop.f32.mrf.mxu1 }
  0xae   :  { %1429 = vmatpush.msrb.mxu2 %v2157_v52  ;;  %1389 = vmatpush.msrb.mxu0 %v2671_v31 }
  0xaf   :  { %1409 = vmatpush.msrb.mxu1 %v2651_v49 }
  0xb0   :  { %1430 = vmatpush.msrb.mxu2 %v2163_v48  ;;  %1390 = vmatpush.msrb.mxu0 %v2672_v32 }
  0xb1   :  { %1410 = vmatpush.msrb.mxu1 %v2652_v0  ;;  %1680 = vmatmul.msk.f32.vlgmr.msrb.gmra.mxu0 %vm164_vm0, %v2296_v1  ;;  %v1456_v0 = vld [vmem:[#allocation8] sm:$0xff] }
  0xb2   :  { %1681 = vmatmul.msk.f32.vlgmr.msrb.gmra.mxu1 %vm164_vm0, %v2296_v1  ;;  %1682 = vmatmul.msk.f32.vlgmr.msrb.gmra.mxu2 %vm164_vm0, %v2296_v1  ;;  %v1463_v2 = vperm.slane %v1456_v0, 1  ;;  %v1462_v9 = vperm.slane %v1456_v0, 0  ;;  %v1464_v13 = vperm.slane %v1456_v0, 2  ;;  %v1465_v14 = vperm.slane %v1456_v0, 3 }
  0xb4   :  { %v2442_v33 = vpop.f32.mrf.mxu2  ;;  %v2444_v34 = vpop.f32.mrf.mxu3 }
  0xb7   :  { %v2446_v35 = vpop.f32.mrf.mxu0  ;;  %v2448_v36 = vpop.f32.mrf.mxu1 }
  0xbe   :  { %v2450_v37 = vpop.f32.mrf.mxu2  ;;  %v2452_v38 = vpop.f32.mrf.mxu3 }
  0xc1   :  { %v2454_v39 = vpop.f32.mrf.mxu0  ;;  %v2456_v40 = vpop.f32.mrf.mxu1 }
  0xc8   :  { %v2458_v41 = vpop.f32.mrf.mxu2  ;;  %v2460_v42 = vpop.f32.mrf.mxu3 }
  0xcb   :  { %v2462_v43 = vpop.f32.mrf.mxu0  ;;  %v608_v44 = vpop.f32.mrf.mxu1 }
  0xcc   :  { %v609_v1 = vadd.f32 %v608_v44, %v2364_v7 }
  0xd2   :  { %v628_v45 = vpop.f32.mrf.mxu2  ;;  %v648_v46 = vpop.f32.mrf.mxu3 }
  0xd3   :  { %v629_v4 = vadd.f32 %v628_v45, %v2366_v8  ;;  %v649_v11 = vadd.f32 %v648_v46, %v2386_v17  ;;  %v1466_v45 = vperm.slane %v1456_v0, 4  ;;  %v1467_v46 = vperm.slane %v1456_v0, 5 }
  0xd5   :  { %v668_v47 = vpop.f32.mrf.mxu0  ;;  %v688_v48 = vpop.f32.mrf.mxu1 }
  0xd6   :  { %v669_v12 = vadd.f32 %v668_v47, %v2388_v18  ;;  %v689_v17 = vadd.f32 %v688_v48, %v2396_v21 }
  0xdc   :  { %v708_v49 = vpop.f32.mrf.mxu2  ;;  %v728_v50 = vpop.f32.mrf.mxu3 }
  0xdd   :  { %v709_v18 = vadd.f32 %v708_v49, %v2398_v22 }
  0xdf   :  { %v748_v51 = vpop.f32.mrf.mxu0  ;;  %v2464_v52 = vpop.f32.mrf.mxu1 }
  0xe6   :  { %v2466_v53 = vpop.f32.mrf.mxu2  ;;  %v2468_v54 = vpop.f32.mrf.mxu3 }
  0xe9   :  { %v2470_v55 = vpop.f32.mrf.mxu0  ;;  %v2472_v56 = vpop.f32.mrf.mxu1 }
  0xf0   :  { %v2474_v57 = vpop.f32.mrf.mxu2  ;;  %v2476_v58 = vpop.f32.mrf.mxu3 }
  0xf3   :  { %v2478_v59 = vpop.f32.mrf.mxu0  ;;  %v2480_v60 = vpop.f32.mrf.mxu1 }
  0xfa   :  { %v2482_v61 = vpop.f32.mrf.mxu2  ;;  %v2484_v62 = vpop.f32.mrf.mxu3 }
  0xfd   :  { %v2486_v63 = vpop.f32.mrf.mxu0  ;;  %v2488_v16 = vpop.f32.mrf.mxu1 }
 0x104   :  { %v1032_v3 = vpop.f32.mrf.mxu2  ;;  %v1052_v5 = vpop.f32.mrf.mxu3 }
 0x105   :  { %v1435_v6 = vadd.f32 %v1032_v3, %v609_v1  ;;  %v1436_v10 = vadd.f32 %v1052_v5, %v629_v4 }
 0x107   :  { %v1505_v15 = vadd.f32 %v1463_v2, %v1436_v10  ;;  %v1072_v19 = vpop.f32.mrf.mxu0  ;;  %v1092_v20 = vpop.f32.mrf.mxu1  ;;  %v1504_v24 = vadd.f32 %v1462_v9, %v1435_v6  ;;  %v729_v6 = vadd.f32 %v728_v50, %v2418_v26  ;;  %v749_v9 = vadd.f32 %v748_v51, %v2420_v27 }
 0x108   :  { %v1437_v23 = vadd.f32 %v1072_v19, %v649_v11  ;;  %v1438_v7 = vadd.f32 %v1092_v20, %v669_v12  ;;  %v1468_v10 = vperm.slane %v1456_v0, 6  ;;  %v1469_v11 = vperm.slane %v1456_v0, 7 }
 0x109   :  { %v1546_v8 = vrot.slane %v1505_v15, 7  ;;  %v769_v27 = vadd.f32 %v2464_v52, %v2426_v29  ;;  %v789_v51 = vadd.f32 %v2466_v53, %v2428_v30  ;;  %v829_v29 = vadd.f32 %v2470_v55, %v2444_v34 }
 0x10a   :  { %v1506_v25 = vadd.f32 %v1464_v13, %v1437_v23  ;;  %v1507_v28 = vadd.f32 %v1465_v14, %v1438_v7  ;;  %v1457_v23 = vld [vmem:[#allocation8 + $0x8] sm:$0xff]  ;;  %v849_v34 = vadd.f32 %v2472_v56, %v2446_v35  ;;  %v869_v55 = vadd.f32 %v2474_v57, %v2448_v36 }
 0x10b   :  { %v1565_v31 = vsel %vm1564_vm1, %v1504_v24, %v1546_v8  ;;  %v1471_v0 = vperm.slane %v1457_v23, 1  ;;  %v809_v24 = vadd.f32 %v2468_v54, %v2442_v33  ;;  %v1472_v52 = vperm.slane %v1457_v23, 2 }
 0x10c   :  { %v1547_v32 = vrot.slane %v1506_v25, 6  ;;  %v1548_v44 = vrot.slane %v1507_v28, 5  ;;  %v1476_v35 = vperm.slane %v1457_v23, 6  ;;  %v1477_v56 = vperm.slane %v1457_v23, 7 }
 0x10e   :  { %v1567_v47 = vsel %vm1566_vm2, %v1547_v32, %v1548_v44  ;;  %v1112_v1 = vpop.f32.mrf.mxu2  ;;  %v1132_v4 = vpop.f32.mrf.mxu3  ;;  %v1470_v44 = vperm.slane %v1457_v23, 0 }
 0x10f   :  { %v1569_v2 = vsel %vm1568_vm3, %v1565_v31, %v1567_v47  ;;  %v1439_v3 = vadd.f32 %v1112_v1, %v689_v17  ;;  %v1440_v5 = vadd.f32 %v1132_v4, %v709_v18  ;;  %v1473_v18 = vperm.slane %v1457_v23, 3 }
 0x111   :  { %v1508_v12 = vadd.f32 %v1466_v45, %v1439_v3  ;;  %v1509_v21 = vadd.f32 %v1467_v46, %v1440_v5  ;;  %v1152_v48 = vpop.f32.mrf.mxu0  ;;  %v1172_v22 = vpop.f32.mrf.mxu1 }
 0x112   :  { %v1441_v49 = vadd.f32 %v1152_v48, %v729_v6  ;;  %v1442_v13 = vadd.f32 %v1172_v22, %v749_v9 }
 0x113   :  { %v1549_v14 = vrot.slane %v1508_v12, 4  ;;  %v1550_v15 = vrot.slane %v1509_v21, 3 }
 0x114   :  { %v1510_v19 = vadd.f32 %v1468_v10, %v1441_v49  ;;  %v1511_v20 = vadd.f32 %v1469_v11, %v1442_v13  ;;  %v1475_v10 = vperm.slane %v1457_v23, 5  ;;  %v889_v13 = vadd.f32 %v2476_v58, %v2450_v37 }
 0x115   :  { %v1571_v7 = vsel %vm1570_vm4, %v1549_v14, %v1550_v15  ;;  %v909_v14 = vadd.f32 %v2478_v59, %v2452_v38  ;;  %v929_v38 = vadd.f32 %v2480_v60, %v2454_v39  ;;  %v949_v58 = vadd.f32 %v2482_v61, %v2456_v40 }
 0x116   :  { %v1551_v26 = vrot.slane %v1510_v19, 2  ;;  %v1552_v50 = vrot.slane %v1511_v20, 1 }
 0x118   :  { %v1573_v8 = vsel %vm1572_vm5, %v1551_v26, %v1552_v50  ;;  %v1192_v25 = vpop.f32.mrf.mxu2  ;;  %v1212_v28 = vpop.f32.mrf.mxu3 }
 0x119   :  { %v1575_v31 = vsel %vm1574_vm6, %v1571_v7, %v1573_v8  ;;  %v1443_v32 = vadd.f32 %v1192_v25, %v769_v27  ;;  %v1444_v17 = vadd.f32 %v1212_v28, %v789_v51 }
 0x11a   :  { %v1577_v30 = vsel %vm1576_vm7, %v1569_v2, %v1575_v31  ;;  %v1474_v2 = vperm.slane %v1457_v23, 4  ;;  %v969_v23 = vadd.f32 %v2484_v62, %v2458_v41  ;;  %v989_v41 = vadd.f32 %v2486_v63, %v2460_v42 }
 0x11b   :  { %v1513_v53 = vadd.f32 %v1471_v0, %v1444_v17  ;;  %v1232_v45 = vpop.f32.mrf.mxu0  ;;  %v1252_v46 = vpop.f32.mrf.mxu1  ;;  %1594 = vst [vmem:[#allocation10] sm:$0xff] %v1577_v30  ;;  %v1512_v47 = vadd.f32 %v1470_v44, %v1443_v32  ;;  %v1458_v0 = vld [vmem:[#allocation8 + $0x10] sm:$0x1f] }
 0x11c   :  { %v1445_v33 = vadd.f32 %v1232_v45, %v809_v24  ;;  %v1446_v54 = vadd.f32 %v1252_v46, %v829_v29  ;;  %v1479_v59 = vperm.slane %v1458_v0, 1  ;;  %v1478_v31 = vperm.slane %v1458_v0, 0 }
 0x11d   :  { %v1553_v1 = vrot.slane %v1513_v53, 7  ;;  %v1481_v46 = vperm.slane %v1458_v0, 3 }
 0x11e   :  { %v1514_v4 = vadd.f32 %v1472_v52, %v1445_v33  ;;  %v1515_v3 = vadd.f32 %v1473_v18, %v1446_v54  ;;  %v1480_v52 = vperm.slane %v1458_v0, 2 }
 0x11f   :  { %v1578_v5 = vsel %vm1564_vm1, %v1512_v47, %v1553_v1  ;;  %v1009_v47 = vadd.f32 %v2488_v16, %v2462_v43  ;;  %v1482_v1 = vperm.slane %v1458_v0, 4 }
 0x120   :  { %v1554_v6 = vrot.slane %v1514_v4, 6  ;;  %v1555_v9 = vrot.slane %v1515_v3, 5 }
 0x122   :  { %v1579_v11 = vsel %vm1566_vm2, %v1554_v6, %v1555_v9  ;;  %v1272_v12 = vpop.f32.mrf.mxu2  ;;  %v1292_v21 = vpop.f32.mrf.mxu3  ;;  %v1596_v9 = vlaneseq }
 0x123   :  { %v1580_v48 = vsel %vm1568_vm3, %v1578_v5, %v1579_v11  ;;  %v1447_v22 = vadd.f32 %v1272_v12, %v849_v34  ;;  %v1448_v49 = vadd.f32 %v1292_v21, %v869_v55 }
 0x124   :  { %vm1598_vm10 = vcmp.lt.s32.totalorder %v1596_v9, 640 }
 0x125   :  { %v1516_v15 = vadd.f32 %v1474_v2, %v1447_v22  ;;  %v1517_v36 = vadd.f32 %v1475_v10, %v1448_v49  ;;  %v1312_v57 = vpop.f32.mrf.mxu0  ;;  %v1332_v19 = vpop.f32.mrf.mxu1 }
 0x126   :  { %v1449_v20 = vadd.f32 %v1312_v57, %v889_v13  ;;  %v1450_v7 = vadd.f32 %v1332_v19, %v909_v14 }
 0x127   :  { %v1556_v26 = vrot.slane %v1516_v15, 4  ;;  %v1557_v50 = vrot.slane %v1517_v36, 3 }
 0x128   :  { %v1518_v27 = vadd.f32 %v1476_v35, %v1449_v20  ;;  %v1519_v51 = vadd.f32 %v1477_v56, %v1450_v7 }
 0x129   :  { %v1581_v24 = vsel %vm1570_vm4, %v1556_v26, %v1557_v50 }
 0x12a   :  { %v1558_v8 = vrot.slane %v1518_v27, 2  ;;  %v1559_v37 = vrot.slane %v1519_v51, 1 }
 0x12c   :  { %v1582_v25 = vsel %vm1572_vm5, %v1558_v8, %v1559_v37  ;;  %v1352_v28 = vpop.f32.mrf.mxu2  ;;  %v1372_v32 = vpop.f32.mrf.mxu3 }
 0x12d   :  { %v1583_v44 = vsel %vm1574_vm6, %v1581_v24, %v1582_v25  ;;  %v1451_v17 = vadd.f32 %v1352_v28, %v929_v38  ;;  %v1452_v29 = vadd.f32 %v1372_v32, %v949_v58 }
 0x12e   :  { %v1392_v18 = vpop.f32.mrf.mxu0  ;;  %v1584_v39 = vsel %vm1576_vm7, %v1580_v48, %v1583_v44 }
 0x12f   :  { %v1521_v60 = vadd.f32 %v1479_v59, %v1452_v29  ;;  %v1453_v30 = vadd.f32 %v1392_v18, %v969_v23  ;;  %v1412_v40 = vpop.f32.mrf.mxu1  ;;  %1595 = vst [vmem:[#allocation10 + $0x8] sm:$0xff] %v1584_v39  ;;  %v1520_v61 = vadd.f32 %v1478_v31, %v1451_v17 }
 0x130   :  { %v1454_v45 = vadd.f32 %v1412_v40, %v989_v41 }
 0x131   :  { %v1560_v62 = vrot.slane %v1521_v60, 7  ;;  %v1522_v53 = vadd.f32 %v1480_v52, %v1453_v30 }
 0x132   :  { %v1523_v5 = vadd.f32 %v1481_v46, %v1454_v45 }
 0x133   :  { %v1585_v33 = vsel %vm1564_vm1, %v1520_v61, %v1560_v62  ;;  %v1561_v54 = vrot.slane %v1522_v53, 6 }
 0x134   :  { %v1562_v42 = vrot.slane %v1523_v5, 5 }
 0x135   :  { %v1586_v4 = vsel %vm1568_vm3, %v1585_v33, %v1561_v54  ;;  %v1432_v3 = vpop.f32.mrf.mxu2 }
 0x136   :  { %v1455_v6 = vadd.f32 %v1432_v3, %v1009_v47 }
 0x138   :  { %v1524_v34 = vadd.f32 %v1482_v1, %v1455_v6 }
 0x13a   :  { %v1563_v63 = vrot.slane %v1524_v34, 4 }
 0x13c   :  { %v1588_v43 = vsel %vm1587_vm8, %v1562_v42, %v1563_v63 }
 0x13d   :  { %v1590_v16 = vsel %vm1589_vm9, %v1586_v4, %v1588_v43 }
 0x13e   :  { %1600 = vst.msk [vmem:[#allocation10 + $0x10] sm:$0x1f] %vm1598_vm10, %v1590_v16 }
 0x13f   :  { %1611 = dma.vmem_to_hbm [thread:$0]  %s1607_s13, 336, %s1609_s16, [#allocation4]  }
 0x140   :  { %1816 = dma.done.wait [#allocation4], 336  }
 0x141   :  { %1817 = vsyncadd [#allocation4], 4294966960 }
 0x142   :  { %1616 = vsyncpa [#allocation3], 1 }
 0x143   :  { %1617 = vsyncpa [#allocation6], 1 }
 0x144   :  { %1618 = vsyncpa [#allocation9], 1 }
 0x145   :  { %1619 = vsyncpa [#allocation4], 1 }

</bundles_post_ra>
